<compile_context>
chip_gen: v7x
topology: tpu7x:2x2x1
jax: 0.10.0
libtpu: 0.0.40
codegen_flags: <defaults>
</compile_context>

<pallas_src>
import jax
import jax.numpy as jnp
from jax.experimental import pallas as pl
from jax.experimental.pallas import tpu as pltpu

LANE = 128
TM = 256   # row tile of the propagation matrix (multiple of 8)
TK = 512   # contraction tile (multiple of 256 for the v6e/v7x 256-wide MXU)


def _round_up(x, m):
    return (x + m - 1) // m * m


def _linear_kernel(x_ref, w_ref, b_ref, h_ref):
    # h = x @ W + b ; computed once per row tile (hoisted out of the M@h loop)
    h = jnp.dot(x_ref[...], w_ref[...], preferred_element_type=jnp.float32)
    h_ref[...] = (h + b_ref[...]).astype(h_ref.dtype)


def _prop_kernel(m_ref, h_ref, out_ref, acc_ref):
    # out[i, :] = sum_k M[i, k_tile] @ h[k_tile, :]   (f32 accumulator)
    @pl.when(pl.program_id(1) == 0)
    def _():
        acc_ref[...] = jnp.zeros_like(acc_ref)

    acc_ref[...] += jnp.dot(m_ref[...], h_ref[...],
                            preferred_element_type=jnp.float32)

    @pl.when(pl.program_id(1) == pl.num_programs(1) - 1)
    def _():
        out_ref[...] = acc_ref[...].astype(out_ref.dtype)


def gcn_my_conv(x, edge_index, w, b):
    """x: [N, Cin] f32, edge_index: [2, E] int32,
       w: [Cin, Cout] (Linear weight already transposed), b: [Cout]."""
    N, cin = x.shape
    cout = w.shape[1]

    np_ = _round_up(max(N, 1), TK)        # multiple of both TM and TK
    cin_p = _round_up(cin, LANE)
    cout_p = _round_up(cout, LANE)

    # ---- glue (plain JAX): self loops, symmetric norm, mean-agg matrix ----
    self_loops = jnp.arange(N, dtype=edge_index.dtype)
    ei = jnp.concatenate(
        [edge_index, jnp.stack([self_loops, self_loops])], axis=1
    )
    row, col = ei[0], ei[1]   # row = source (x_j), col = target (aggregation)

    deg = jnp.zeros((N,), jnp.float32).at[row].add(1.0)
    dinv = deg ** -0.5
    norm = dinv[row] * dinv[col]
    in_cnt = jnp.zeros((N,), jnp.float32).at[col].add(1.0)
    norm = norm / jnp.maximum(in_cnt[col], 1.0)      # fold mean divide into M

    # TODO(synk): for large sparse graphs, replace the dense O(N^2) propagation
    # matrix with CSR (row_ptr/col_idx/norm) + scalar-prefetch / manual DMA
    # gather; the dense form is only appropriate for small/medium N.
    m_dense = jnp.zeros((np_, np_), jnp.float32).at[col, row].add(norm)
    m_bf16 = m_dense.astype(jnp.bfloat16)

    x_p = jnp.pad(x.astype(jnp.float32), ((0, np_ - N), (0, cin_p - cin)))
    w_p = jnp.pad(w.astype(jnp.float32), ((0, cin_p - cin), (0, cout_p - cout)))
    b_p = jnp.pad(b.astype(jnp.float32), (0, cout_p - cout)).reshape(1, cout_p)

    # ---- phase 1: h = x @ W + b  (row-tiled, lane-dense, bf16 output) ----
    lin_cost = pl.CostEstimate(
        flops=2 * np_ * cin_p * cout_p,
        transcendentals=0,
        bytes_accessed=4 * (np_ * cin_p + cin_p * cout_p) + 2 * np_ * cout_p,
    )
    h = pl.pallas_call(
        _linear_kernel,
        out_shape=jax.ShapeDtypeStruct((np_, cout_p), jnp.bfloat16),
        grid=(np_ // TM,),
        in_specs=[
            pl.BlockSpec((TM, cin_p), lambda i: (i, 0)),       # x row tile
            pl.BlockSpec((cin_p, cout_p), lambda i: (0, 0)),   # W (resident)
            pl.BlockSpec((1, cout_p), lambda i: (0, 0)),       # bias
        ],
        out_specs=pl.BlockSpec((TM, cout_p), lambda i: (i, 0)),
        compiler_params=pltpu.CompilerParams(
            dimension_semantics=("parallel",),
            vmem_limit_bytes=32 * 1024 * 1024,
        ),
        cost_estimate=lin_cost,
    )(x_p, w_p, b_p)

    # ---- phase 2: out = M @ h (tiled; f32 accumulator across the K axis) ----
    prop_cost = pl.CostEstimate(
        flops=2 * np_ * np_ * cout_p,
        transcendentals=0,
        bytes_accessed=2 * np_ * np_ + 2 * np_ * cout_p + 4 * np_ * cout_p,
    )
    out_p = pl.pallas_call(
        _prop_kernel,
        out_shape=jax.ShapeDtypeStruct((np_, cout_p), jnp.float32),
        grid=(np_ // TM, np_ // TK),
        in_specs=[
            pl.BlockSpec((TM, TK), lambda i, k: (i, k)),        # M tile (bf16)
            pl.BlockSpec((TK, cout_p), lambda i, k: (k, 0)),    # h tile (bf16)
        ],
        out_specs=pl.BlockSpec((TM, cout_p), lambda i, k: (i, 0)),
        scratch_shapes=[pltpu.VMEM((TM, cout_p), jnp.float32)],
        compiler_params=pltpu.CompilerParams(
            dimension_semantics=("parallel", "arbitrary"),
            vmem_limit_bytes=32 * 1024 * 1024,
        ),
        cost_estimate=prop_cost,
    )(m_bf16, h)

    return out_p[:N, :cout]


def gcn_reference(x, edge_index, w, b):
    """Pure-JAX f32 reference (scatter/gather form) for sanity checking."""
    N = x.shape[0]
    self_loops = jnp.arange(N, dtype=edge_index.dtype)
    ei = jnp.concatenate(
        [edge_index, jnp.stack([self_loops, self_loops])], axis=1
    )
    row, col = ei[0], ei[1]
    h = x @ w + b
    deg = jnp.zeros((N,), x.dtype).at[row].add(1.0)
    dinv = deg ** -0.5
    norm = dinv[row] * dinv[col]
    msg = norm[:, None] * h[row]
    summed = jnp.zeros((N, h.shape[1]), x.dtype).at[col].add(msg)
    cnt = jnp.zeros((N,), x.dtype).at[col].add(1.0)
    return summed / jnp.maximum(cnt, 1.0)[:, None]


if __name__ == "__main__":
    key = jax.random.PRNGKey(0)
    N, C_IN, C_OUT, E = 16, 8, 32, 40

    k_x, k_e0, k_e1, k_w, k_b = jax.random.split(key, 5)
    x = jax.random.normal(k_x, (N, C_IN), dtype=jnp.float32)
    edge_index = jnp.stack(
        [
            jax.random.randint(k_e0, (E,), 0, N, dtype=jnp.int32),
            jax.random.randint(k_e1, (E,), 0, N, dtype=jnp.int32),
        ]
    )

    # nn.Linear(in, out)-style init; stored transposed as [Cin, Cout]
    bound = 1.0 / (C_IN ** 0.5)
    w = jax.random.uniform(
        k_w, (C_IN, C_OUT), minval=-bound, maxval=bound, dtype=jnp.float32
    )
    b = jax.random.uniform(
        k_b, (C_OUT,), minval=-bound, maxval=bound, dtype=jnp.float32
    )

    out = gcn_my_conv(x, edge_index, w, b)
    out = jax.block_until_ready(out)

    ref = gcn_reference(x, edge_index, w, b)
    assert out.shape == (N, C_OUT)
    # bf16 MXU inputs (f32 accumulation) -> compare against f32 reference with
    # a bf16-appropriate tolerance.
    assert jnp.allclose(out, ref, atol=2e-2, rtol=2e-2), (
        float(jnp.max(jnp.abs(out - ref)))
    )

    print("KERNEL_OK")
</pallas_src>

<mosaic_0001>
module attributes {stable_mosaic.version = 11 : i64} {
  func.func @_linear_kernel(%arg0: i32, %arg1: memref<256x128xf32, #tpu.memory_space<vmem>>, %arg2: memref<128x128xf32, #tpu.memory_space<vmem>>, %arg3: memref<1x128xf32, #tpu.memory_space<vmem>>, %arg4: memref<256x128xbf16, #tpu.memory_space<vmem>>) attributes {dimension_semantics = [#tpu.dimension_semantics<parallel>], iteration_bounds = array<i64: 2>, scalar_prefetch = 0 : i64, scratch_operands = 0 : i64, tpu.core_type = #tpu.core_type<tc>, window_params = [{transform_indices = @transform_0, window_bounds = array<i64: 256, 128>}, {pipeline_mode = #tpu.pipeline_mode<synchronous>, transform_indices = @transform_1, window_bounds = array<i64: 128, 128>}, {pipeline_mode = #tpu.pipeline_mode<synchronous>, transform_indices = @transform_2, window_bounds = array<i64: 1, 128>}, {transform_indices = @transform_3, window_bounds = array<i64: 256, 128>}]} {
    %c0 = arith.constant 0 : index
    %c0_0 = arith.constant 0 : index
    %0 = vector.load %arg1[%c0, %c0_0] : memref<256x128xf32, #tpu.memory_space<vmem>>, vector<256x128xf32>
    %c0_1 = arith.constant 0 : index
    %c0_2 = arith.constant 0 : index
    %1 = vector.load %arg2[%c0_1, %c0_2] : memref<128x128xf32, #tpu.memory_space<vmem>>, vector<128x128xf32>
    %cst = arith.constant dense<0.000000e+00> : vector<256x128xf32>
    %2 = tpu.matmul %0, %1, %cst {dimension_numbers = #tpu.dot_dimension_numbers<[1], [0], [0], [1], [0, 0, 1, 1], [], []>} : vector<256x128xf32>, vector<128x128xf32>, vector<256x128xf32> -> vector<256x128xf32>
    %c0_3 = arith.constant 0 : index
    %c0_4 = arith.constant 0 : index
    %3 = vector.load %arg3[%c0_3, %c0_4] : memref<1x128xf32, #tpu.memory_space<vmem>>, vector<1x128xf32>
    %4 = vector.broadcast %3 : vector<1x128xf32> to vector<256x128xf32>
    %5 = arith.addf %2, %4 : vector<256x128xf32>
    %6 = arith.truncf %5 : vector<256x128xf32> to vector<256x128xbf16>
    %c0_5 = arith.constant 0 : index
    %c0_6 = arith.constant 0 : index
    %7 = vector.load %arg4[%c0_5, %c0_6] : memref<256x128xbf16, #tpu.memory_space<vmem>>, vector<256x128xbf16>
    tpu.vector_store %arg4[%c0_5, %c0_6], %6 {strides = array<i32>} : memref<256x128xbf16, #tpu.memory_space<vmem>>, vector<256x128xbf16>,
    return
  }
  func.func @transform_0(%arg0: i32) -> (i32, i32) {
    %c0_i32 = arith.constant 0 : i32
    %c0_i32_0 = arith.constant 0 : i32
    return %arg0, %c0_i32 : i32, i32
  }
  func.func @transform_1(%arg0: i32) -> (i32, i32) {
    %c0_i32 = arith.constant 0 : i32
    %c0_i32_0 = arith.constant 0 : i32
    %c0_i32_1 = arith.constant 0 : i32
    return %c0_i32, %c0_i32_0 : i32, i32
  }
  func.func @transform_2(%arg0: i32) -> (i32, i32) {
    %c0_i32 = arith.constant 0 : i32
    %c0_i32_0 = arith.constant 0 : i32
    %c0_i32_1 = arith.constant 0 : i32
    return %c0_i32, %c0_i32_0 : i32, i32
  }
  func.func @transform_3(%arg0: i32) -> (i32, i32) {
    %c0_i32 = arith.constant 0 : i32
    %c0_i32_0 = arith.constant 0 : i32
    return %arg0, %c0_i32 : i32, i32
  }
}

</mosaic_0001>

<bundles_post_ra>
// kernel: tpu_custom_call.1
= control target key start
LH: loop header
LB: loop body
LE: loop exit
PB: predicated region body
PF: predicated region fallthrough
CT: control target
= control target key end

     0   :  { %8 = vsyncpa [#allocation3], 0  ;;  %s1613_s0 = inlined_call_operand.hbm [shape: f32[512,128], index: 0, kind: input, shape index: {}]   ;;  %s1614_s1 = inlined_call_operand.hbm [shape: f32[128,128], index: 1, kind: input, shape index: {}]   ;;  %s1615_s2 = inlined_call_operand.vmem [shape: f32[1,128], index: 2, kind: input, shape index: {}]   ;;  %s1616_s3 = inlined_call_operand.hbm [shape: bf16[512,128], index: 3, kind: output, shape index: {}]  }
   0x1   :  { %10 = vsyncpa [#allocation3 + $0x1], 0 }
   0x2   :  { %11 = vsyncpa [#allocation6], 0 }
   0x3   :  { %12 = vsyncpa [#allocation4], 0 }
   0x4   :  { %14 = vsyncpa [#allocation4 + $0x1], 0  ;;  %s1315_s12 = smov 0   ;;  %s1317_s13 = smov 0  }
   0x5   :  { %s1319_s14 = smov 0   ;;  %s1321_s15 = smov 0  }
   0x6 LB: > { %s1336_s16 = sadd.s32 4294967295, %s1286_s15   ;;  %s743_s17 = sadd.s32 4294967294, %s1286_s15   ;;  %s1286_s15 = sphi %s1321_s15, %s1636_s15   ;;  %s1282_s14 = sphi %s1319_s14, %s1635_s14   ;;  %s1278_s13 = sphi %s1317_s13, %s1634_s13   ;;  %s1274_s12 = sphi %s1315_s12, %s1633_s12  }
   0x7   : > { %p40_p0 = scmp.ne.s32.totalorder %s1278_s13, %s1274_s12  ;;  %p1617_p1 = scmp.eq.s32.totalorder %s1336_s16, 0 }
   0x8   : > { %p112_p3 = scmp.eq.s32.totalorder %s743_s17, 1  ;;  %p744_p5 = scmp.ge.s32.totalorder %s1286_s15, 1 }
   0x9   : > { %p1345_p4 = por %p1617_p1, %p40_p0  ;;  %p119_p7 = scmp.lt.s32.totalorder %s1286_s15, 3 }
   0xa   : > { %p1350_p6 = por %p112_p3, %p40_p0  ;;  %s1288_s21 = smov [#allocation5]  }
   0xb   : > { %s1620_s18 = scalar_select %p1345_p4, 1, 0 }
   0xc   : > { %s1621_s19 = scalar_select %p1350_p6, 1, 0 }
   0xd   : > { %p1355_p8 = pnand %p744_p5, %p119_p7  ;;  %s131_s22 = sshll.u32 %s1288_s21, 4  ;;  %s1359_s22 = int_to_ptr.vmem [resolvable:$true] %s131_s22 }
   0xe   : > { %s1371_s24 = sadd.s32 1, %s1286_s15   ;;  %s27_s25 = sadd.s32 1, %s1282_s14 }
   0xf   : > { %s1622_s20 = scalar_select %p1355_p8, 1, 0 }
  0x10   : > { %p1105_p9 = pneg %p1355_p8  ;;  %s24_s26 = ssub.s32 %s1286_s15, %s1371_s24 }
  0x11   : > { %s1158_s29 = scalar_lea.hbm %s1614_s1, 2048 }
  0x12   : > { %p1366_p11 = pnand %p1105_p9, %p1617_p1  ;;  %p1159_p12 = scmp.ne.s32.totalorder %s1614_s1, %s1158_s29 }
  0x13   : > { %p1165_p5 = scmp.lt.u32.totalorder %s1158_s29, %s1614_s1 }
  0x14   : > { %p1160_p13 = pneg %p1366_p11 }
  0x16   : > { %p1161_p0 = pnand %p1160_p13, %p1159_p12 }
  0x18   : > { %p1162_p3 = pneg %p1161_p0 }
  0x1a   : > { %p1167_p7 = pnand %p1165_p5, %p1162_p3 }
  0x1c   : > { %1170 = shalt.err (!%p1167_p7)
}
  0x1d   : > { %s1171_s7 = scalar_lea.vmem %s1359_s22, 2048  ;;  %p1179_p2 = scmp.lt.s32.totalorder %s1359_s22, %s1359_s22 }
  0x1e   : > { %p1172_p9 = scmp.ne.s32.totalorder %s1359_s22, %s1171_s7  ;;  %p1180_p6 = scmp.lt.s32.totalorder %s1171_s7, %s1171_s7 }
  0x20   : > { %p1174_p10 = pnand %p1172_p9, %p1160_p13  ;;  %p1181_p4 = por %p1180_p6, %p1179_p2 }
  0x22   : > { %p1175_p1 = pneg %p1174_p10 }
  0x24   : > { %p1182_p8 = pnand %p1181_p4, %p1175_p1 }
  0x26   : > { %1185 = shalt.err (!%p1182_p8)
}
  0x27   : > { %s1289_s8 = smov 128   ;;  %s1290_s9 = smov 8  }
  0x28   : > { %1108 = dma.hbm_to_vmem [thread:$0]  (!%p1366_p11), %s1614_s1, 2048, %s1359_s22, [#allocation6], %s1289_s8, %s1289_s8, %s1290_s9  }
  0x29   : > { %p25_p1 = scmp.eq.s32.totalorder %s24_s26, 0  ;;  %p34_p2 = scmp.ne.s32.totalorder %s1282_s14, %s1278_s13 }
  0x2a   : > { %p35_p4 = scmp.eq.s32.totalorder %s1286_s15, 0  ;;  %p1118_p6 = scmp.lt.s32.totalorder %s1286_s15, 2 }
  0x2b   : > { %s1405_s17 = scalar_select %p25_p1, %s1282_s14, %s27_s25  }
  0x2c   : > { %p36_p8 = por %p35_p4, %p34_p2  ;;  %p1624_p10 = scmp.eq.s32.totalorder %s1336_s16, 1 }
  0x2d   : > { %s148_s23 = sand.u32 1, %s1282_s14   ;;  %s792_s27 = sshll.u32 %s1286_s15, 12 }
  0x2e   : > { %p1409_p12 = por %p1624_p10, %p34_p2  ;;  %s747_s28 = sshll.u32 %s148_s23, 8 }
  0x2f   : > { %s1418_s4 = scalar_lea.hbm %s1613_s0, %s792_s27  ;;  %s152_s22 = scalar_lea.vmem [#allocation2], %s747_s28 }
  0x30   : > { %s159_s25 = sshll.u32 %s152_s22, 4  ;;  %p1420_p11 = pnand %p1118_p6, %p36_p8  ;;  %s1424_s25 = int_to_ptr.vmem [resolvable:$true] %s159_s25 }
  0x31   : > { %s1426_s5 = scalar_lea.sflag [#allocation3], %s148_s23  ;;  %s1186_s6 = scalar_lea.hbm %s1418_s4, 4096 }
  0x32   : > { %p1187_p13 = scmp.ne.s32.totalorder %s1418_s4, %s1186_s6  ;;  %p1188_p0 = pneg %p1420_p11 }
  0x33   : > { %s1191_s11 = scalar_lea.hbm %s1613_s0, 8192  ;;  %p1192_p7 = scmp.lt.u32.totalorder %s1418_s4, %s1613_s0 }
  0x34   : > { %p1189_p3 = pnand %p1188_p0, %p1187_p13  ;;  %p1193_p9 = scmp.lt.u32.totalorder %s1191_s11, %s1186_s6 }
  0x35   : > { %p1195_p2 = scmp.lt.u32.totalorder %s1186_s6, %s1418_s4 }
  0x36   : > { %p1190_p5 = pneg %p1189_p3  ;;  %p1194_p1 = por %p1193_p9, %p1192_p7 }
  0x38   : > { %p1196_p4 = por %p1195_p2, %p1194_p1 }
  0x3a   : > { %p1197_p6 = pnand %p1196_p4, %p1190_p5 }
  0x3c   : > { %1200 = shalt.err (!%p1197_p6)
}
  0x3d   : > { %s1201_s23 = scalar_lea.vmem %s1424_s25, 4096  ;;  %s1291_s29 = smov [#allocation2]  }
  0x3e   : > { %p1202_p8 = scmp.ne.s32.totalorder %s1424_s25, %s1201_s23  ;;  %s1206_s30 = sshll.u32 %s1291_s29, 4  ;;  %s1207_s30 = int_to_ptr.vmem [resolvable:$false] %s1206_s30 }
  0x3f   : > { %s1208_s22 = scalar_lea.vmem %s1207_s30, 8192  ;;  %p1209_p3 = scmp.lt.s32.totalorder %s1424_s25, %s1207_s30 }
  0x40   : > { %p1204_p10 = pnand %p1202_p8, %p1188_p0  ;;  %p1210_p7 = scmp.lt.s32.totalorder %s1208_s22, %s1201_s23 }
  0x42   : > { %p1205_p13 = pneg %p1204_p10  ;;  %p1211_p9 = por %p1210_p7, %p1209_p3 }
  0x44   : > { %p1212_p1 = pnand %p1211_p9, %p1205_p13 }
  0x46   : > { %1215 = shalt.err (!%p1212_p1)
}
  0x47   : > { %1112 = dma.hbm_to_vmem [thread:$0]  (!%p1420_p11), %s1418_s4, 4096, %s1424_s25, %s1426_s5, %s1289_s8, %s1289_s8, %s1290_s9  }
  0x48   : > { %p1627_p0 = scmp.ne.s32.totalorder %s1622_s20, 0 }
  0x49   : > { %s1460_s6 = sand.u32 (!%p1627_p0), 1, %s1278_s13   ;;  %p1628_p5 = scmp.ne.s32.totalorder (!%p1627_p0), %s1620_s18, 0 }
  0x4a   : > { %171 = sbr.rel (%p1627_p0) target bundleno = 380 (0x17c), region = 32  ;;  %s751_s7 = sshll.u32 (!%p1627_p0), %s1460_s6, 8 }
  0x4b   : > { %s174_s10 = scalar_lea.sflag (!%p1627_p0), [#allocation3], %s1460_s6  ;;  %s1464_s11 = scalar_lea.vmem (!%p1627_p0), [#allocation2], %s751_s7 }
  0x51   : > { %1261 = dma.done.wait (%p1628_p5), %s174_s10, 4096  }
  0x52   : > { %1263 = vsyncadd (%p1628_p5), %s174_s10, 4294963200  ;;  %p1629_p11 = scmp.eq.s32.totalorder %s1336_s16, 0 }
  0x54   : > { %1265 = dma.done.wait (%p1629_p11), [#allocation6], 2048   ;;  %p1630_p2 = pmov %p1629_p11 }
  0x55   : > { %v238_v0 = vld [vmem:[#allocation5] sm:$0xff]  ;;  %v239_v1 = vld [vmem:[#allocation5 + $0x8] sm:$0xff]  ;;  %v240_v2 = vld [vmem:[#allocation5 + $0x10] sm:$0xff]  ;;  %s753_s8 = sshll.u32 %s1460_s6, 7  ;;  %s825_s4 = sshll.u32 %s1336_s16, 11 }
  0x56   : > { %1267 = vsyncadd (%p1630_p2), [#allocation6], 4294965248  ;;  %v1049_v3 = vpack.c.bf16 %v239_v1, %v238_v0  ;;  %v241_v4 = vld [vmem:[#allocation5 + $0x18] sm:$0xff]  ;;  %v242_v6 = vld [vmem:[#allocation5 + $0x20] sm:$0xff]  ;;  %s1518_s9 = scalar_lea.vmem [#allocation7], %s753_s8  ;;  %s1565_s27 = scalar_lea.hbm %s1616_s3, %s825_s4 }
  0x57   : > { %v1053_v5 = vpack.c.bf16 %v241_v4, %v240_v2  ;;  %v243_v7 = vld [vmem:[#allocation5 + $0x28] sm:$0xff]  ;;  %v206_v9 = vld [vmem:[%s1464_s11] sm:$0xff]  ;;  %v244_v11 = vld [vmem:[#allocation5 + $0x30] sm:$0xff]  ;;  %s660_s25 = sshll.u32 %s1518_s9, 4  ;;  %s647_s16 = scalar_lea.sflag [#allocation4], %s1460_s6  ;;  %s1567_s25 = int_to_ptr.vmem [resolvable:$true] %s660_s25 }
  0x58   : > { %1050 = vmatprep.subr.bf16.mxu0 %v1049_v3  ;;  %1081 = vmatprep.subr.bf16.mxu1 %v1049_v3  ;;  %v1057_v8 = vpack.c.bf16 %v243_v7, %v242_v6  ;;  %v222_v10 = vld [vmem:[%s1464_s11 + $0x80] sm:$0xff]  ;;  %v245_v12 = vld [vmem:[#allocation5 + $0x38] sm:$0xff]  ;;  %v247_v15 = vld [vmem:[#allocation5 + $0x48] sm:$0xff]  ;;  %s1216_s28 = scalar_lea.vmem %s1567_s25, 2048  ;;  %s1292_s23 = smov [#allocation7]  }
  0x59   : > { %1052 = vmatpush3.bf16.msra.mxu0 %v1049_v3  ;;  %1089 = vmatpush3.bf16.msra.mxu1 %v1049_v3  ;;  %v1061_v13 = vpack.c.bf16 %v245_v12, %v244_v11  ;;  %v246_v14 = vld [vmem:[#allocation5 + $0x40] sm:$0xff]  ;;  %v248_v17 = vld [vmem:[#allocation5 + $0x50] sm:$0xff]  ;;  %v249_v18 = vld [vmem:[#allocation5 + $0x58] sm:$0xff]  ;;  %p1217_p4 = scmp.ne.s32.totalorder %s1567_s25, %s1216_s28  ;;  %s1220_s29 = sshll.u32 %s1292_s23, 4  ;;  %s1221_s29 = int_to_ptr.vmem [resolvable:$false] %s1220_s29 }
  0x5a   : > { %1054 = vmatprep.subr.bf16.mxu0 %v1053_v5  ;;  %1082 = vmatprep.subr.bf16.mxu1 %v1053_v5  ;;  %v1065_v16 = vpack.c.bf16 %v247_v15, %v246_v14  ;;  %v1069_v19 = vpack.c.bf16 %v249_v18, %v248_v17  ;;  %v250_v20 = vld [vmem:[#allocation5 + $0x60] sm:$0xff]  ;;  %v251_v21 = vld [vmem:[#allocation5 + $0x68] sm:$0xff]  ;;  %v252_v23 = vld [vmem:[#allocation5 + $0x70] sm:$0xff]  ;;  %s1222_s30 = scalar_lea.vmem %s1221_s29, 4096  ;;  %p1223_p10 = scmp.lt.s32.totalorder %s1567_s25, %s1221_s29 }
  0x5b   : > { %1001 = vmatprep.mubr.f32.mxu0 %v206_v9  ;;  %1025 = vmatprep.mubr.f32.mxu1 %v222_v10  ;;  %v1073_v22 = vpack.c.bf16 %v251_v21, %v250_v20  ;;  %v253_v24 = vld [vmem:[#allocation5 + $0x78] sm:$0xff]  ;;  %v207_v26 = vld [vmem:[%s1464_s11 + $0x8] sm:$0xff]  ;;  %v208_v28 = vld [vmem:[%s1464_s11 + $0x10] sm:$0xff]  ;;  %p1218_p6 = pnand %p1217_p4, %p1409_p12  ;;  %p1224_p13 = scmp.lt.s32.totalorder %s1222_s30, %s1216_s28 }
  0x5c   : > { %v1077_v25 = vpack.c.bf16 %v253_v24, %v252_v23  ;;  %v223_v27 = vld [vmem:[%s1464_s11 + $0x88] sm:$0xff]  ;;  %v224_v29 = vld [vmem:[%s1464_s11 + $0x90] sm:$0xff]  ;;  %v209_v30 = vld [vmem:[%s1464_s11 + $0x18] sm:$0xff] }
  0x5d   : > { %1056 = vmatpush3.bf16.msra.mxu0 %v1053_v5  ;;  %1090 = vmatpush3.bf16.msra.mxu1 %v1053_v5  ;;  %v225_v31 = vld [vmem:[%s1464_s11 + $0x98] sm:$0xff]  ;;  %v210_v32 = vld [vmem:[%s1464_s11 + $0x20] sm:$0xff]  ;;  %v211_v34 = vld [vmem:[%s1464_s11 + $0x28] sm:$0xff]  ;;  %p1219_p8 = pneg %p1218_p6  ;;  %p1225_p3 = por %p1224_p13, %p1223_p10 }
  0x5e   : > { %1058 = vmatprep.subr.bf16.mxu0 %v1057_v8  ;;  %1083 = vmatprep.subr.bf16.mxu1 %v1057_v8  ;;  %v226_v33 = vld [vmem:[%s1464_s11 + $0xa0] sm:$0xff]  ;;  %v227_v35 = vld [vmem:[%s1464_s11 + $0xa8] sm:$0xff]  ;;  %v212_v36 = vld [vmem:[%s1464_s11 + $0x30] sm:$0xff] }
  0x5f   : > { %v228_v37 = vld [vmem:[%s1464_s11 + $0xb0] sm:$0xff]  ;;  %v213_v38 = vld [vmem:[%s1464_s11 + $0x38] sm:$0xff]  ;;  %v214_v40 = vld [vmem:[%s1464_s11 + $0x40] sm:$0xff]  ;;  %p1226_p7 = pnand %p1225_p3, %p1219_p8 }
  0x60   : > { %v229_v39 = vld [vmem:[%s1464_s11 + $0xb8] sm:$0xff]  ;;  %v230_v41 = vld [vmem:[%s1464_s11 + $0xc0] sm:$0xff]  ;;  %v215_v42 = vld [vmem:[%s1464_s11 + $0x48] sm:$0xff] }
  0x61   : > { %1060 = vmatpush3.bf16.msra.mxu0 %v1057_v8  ;;  %1091 = vmatpush3.bf16.msra.mxu1 %v1057_v8  ;;  %v231_v43 = vld [vmem:[%s1464_s11 + $0xc8] sm:$0xff]  ;;  %v216_v44 = vld [vmem:[%s1464_s11 + $0x50] sm:$0xff]  ;;  %v217_v46 = vld [vmem:[%s1464_s11 + $0x58] sm:$0xff] }
  0x62   : > { %1062 = vmatprep.subr.bf16.mxu0 %v1061_v13  ;;  %1084 = vmatprep.subr.bf16.mxu1 %v1061_v13  ;;  %v232_v45 = vld [vmem:[%s1464_s11 + $0xd0] sm:$0xff]  ;;  %v233_v47 = vld [vmem:[%s1464_s11 + $0xd8] sm:$0xff]  ;;  %v218_v48 = vld [vmem:[%s1464_s11 + $0x60] sm:$0xff] }
  0x63   : > { %v234_v49 = vld [vmem:[%s1464_s11 + $0xe0] sm:$0xff]  ;;  %v219_v50 = vld [vmem:[%s1464_s11 + $0x68] sm:$0xff]  ;;  %v220_v52 = vld [vmem:[%s1464_s11 + $0x70] sm:$0xff] }
  0x64   : > { %v235_v51 = vld [vmem:[%s1464_s11 + $0xe8] sm:$0xff]  ;;  %v236_v53 = vld [vmem:[%s1464_s11 + $0xf0] sm:$0xff]  ;;  %v221_v54 = vld [vmem:[%s1464_s11 + $0x78] sm:$0xff] }
  0x65   : > { %1064 = vmatpush3.bf16.msra.mxu0 %v1061_v13  ;;  %1092 = vmatpush3.bf16.msra.mxu1 %v1061_v13  ;;  %v237_v55 = vld [vmem:[%s1464_s11 + $0xf8] sm:$0xff]  ;;  %v1509_v56 = vld [vmem:[%s1615_s2] ss:$0 sm:$0xff] }
  0x66   : > { %1066 = vmatprep.subr.bf16.mxu0 %v1065_v16  ;;  %1085 = vmatprep.subr.bf16.mxu1 %v1065_v16 }
  0x69   : > { %1068 = vmatpush3.bf16.msra.mxu0 %v1065_v16  ;;  %1093 = vmatpush3.bf16.msra.mxu1 %v1065_v16 }
  0x6a   : > { %1070 = vmatprep.subr.bf16.mxu0 %v1069_v19  ;;  %1086 = vmatprep.subr.bf16.mxu1 %v1069_v19 }
  0x6d   : > { %1072 = vmatpush3.bf16.msra.mxu0 %v1069_v19  ;;  %1094 = vmatpush3.bf16.msra.mxu1 %v1069_v19 }
  0x6e   : > { %1074 = vmatprep.subr.bf16.mxu0 %v1073_v22  ;;  %1087 = vmatprep.subr.bf16.mxu1 %v1073_v22 }
  0x71   : > { %1076 = vmatpush3.bf16.msra.mxu0 %v1073_v22  ;;  %1095 = vmatpush3.bf16.msra.mxu1 %v1073_v22 }
  0x72   : > { %1078 = vmatprep.subr.bf16.mxu0 %v1077_v25  ;;  %1088 = vmatprep.subr.bf16.mxu1 %v1077_v25 }
  0x75   : > { %1080 = vmatpush3.bf16.msra.mxu0 %v1077_v25  ;;  %1096 = vmatpush3.bf16.msra.mxu1 %v1077_v25 }
  0x78   : > { %1002 = vmatmul.mubr.f32.vlgmr.msra.gmra.mrb[0].mxu0 %v207_v26  ;;  %1026 = vmatmul.mubr.f32.vlgmr.msra.gmra.mrb[0].mxu1 %v223_v27 }
  0x79   : > { %1004 = vmatprep.mubr.f32.mxu0 %v208_v28  ;;  %1028 = vmatprep.mubr.f32.mxu1 %v224_v29 }
  0x7c   : > { %1005 = vmatmul.mubr.f32.gmra.mrb[2].mxu0 %v209_v30  ;;  %1029 = vmatmul.mubr.f32.gmra.mrb[2].mxu1 %v225_v31 }
  0x7d   : > { %1007 = vmatprep.mubr.f32.mxu0 %v210_v32  ;;  %1031 = vmatprep.mubr.f32.mxu1 %v226_v33 }
  0x80   : > { %1008 = vmatmul.mubr.f32.gmra.mrb[4].mxu0 %v211_v34  ;;  %1032 = vmatmul.mubr.f32.gmra.mrb[4].mxu1 %v227_v35 }
  0x81   : > { %1010 = vmatprep.mubr.f32.mxu0 %v212_v36  ;;  %1034 = vmatprep.mubr.f32.mxu1 %v228_v37 }
  0x84   : > { %1011 = vmatmul.mubr.f32.gmra.mrb[6].mxu0 %v213_v38  ;;  %1035 = vmatmul.mubr.f32.gmra.mrb[6].mxu1 %v229_v39 }
  0x85   : > { %1013 = vmatprep.mubr.f32.mxu0 %v214_v40  ;;  %1037 = vmatprep.mubr.f32.mxu1 %v230_v41 }
  0x88   : > { %1014 = vmatmul.mubr.f32.gmra.mrb[8].mxu0 %v215_v42  ;;  %1038 = vmatmul.mubr.f32.gmra.mrb[8].mxu1 %v231_v43 }
  0x89   : > { %1016 = vmatprep.mubr.f32.mxu0 %v216_v44  ;;  %1040 = vmatprep.mubr.f32.mxu1 %v232_v45 }
  0x8c   : > { %1017 = vmatmul.mubr.f32.gmra.mrb[10].mxu0 %v217_v46  ;;  %1041 = vmatmul.mubr.f32.gmra.mrb[10].mxu1 %v233_v47 }
  0x8d   : > { %1019 = vmatprep.mubr.f32.mxu0 %v218_v48  ;;  %1043 = vmatprep.mubr.f32.mxu1 %v234_v49 }
  0x90   : > { %1020 = vmatmul.mubr.f32.gmra.mrb[12].mxu0 %v219_v50  ;;  %1044 = vmatmul.mubr.f32.gmra.mrb[12].mxu1 %v235_v51 }
  0x91   : > { %1022 = vmatprep.mubr.f32.mxu0 %v220_v52  ;;  %1046 = vmatprep.mubr.f32.mxu1 %v236_v53 }
  0x94   : > { %1023 = vmatmul.mubr.f32.gmra.mrb[14].mxu0 %v221_v54  ;;  %1047 = vmatmul.mubr.f32.gmra.mrb[14].mxu1 %v237_v55 }
 0x14b   : > { %v1003_v57 = vpop.f32.mrb[0].mxu0  ;;  %v1027_v58 = vpop.f32.mrb[0].mxu1 }
 0x14c   : > { %v333_v59 = vadd.f32 %v1003_v57, %v1509_v56  ;;  %v413_v60 = vadd.f32 %v1027_v58, %v1509_v56  ;;  %v327_v61 = vpop.f32.mrb[1].mxu0  ;;  %v407_v62 = vpop.f32.mrb[1].mxu1 }
 0x14d   : > { %v328_v63 = vadd.f32 %v1509_v56, %v327_v61  ;;  %v408_v0 = vadd.f32 %v1509_v56, %v407_v62 }
 0x14f   : > { %v829_v1 = vpack.c.bf16 %v333_v59, %v328_v63  ;;  %v869_v2 = vpack.c.bf16 %v413_v60, %v408_v0  ;;  %v1006_v3 = vpop.f32.mrb[2].mxu0  ;;  %v1030_v4 = vpop.f32.mrb[2].mxu1 }
 0x150   : > { %v343_v5 = vadd.f32 %v1006_v3, %v1509_v56  ;;  %v423_v6 = vadd.f32 %v1030_v4, %v1509_v56  ;;  %v337_v7 = vpop.f32.mrb[3].mxu0  ;;  %v417_v8 = vpop.f32.mrb[3].mxu1 }
 0x151   : > { %830 = vst [vmem:[%s1518_s9] sm:$0xff] %v829_v1   ;;  %913 = vst [vmem:[%s1518_s9 + $0x40] sm:$0xff] %v869_v2   ;;  %v338_v9 = vadd.f32 %v1509_v56, %v337_v7  ;;  %v418_v10 = vadd.f32 %v1509_v56, %v417_v8 }
 0x153   : > { %v834_v11 = vpack.c.bf16 %v343_v5, %v338_v9  ;;  %v874_v12 = vpack.c.bf16 %v423_v6, %v418_v10  ;;  %v1009_v13 = vpop.f32.mrb[4].mxu0  ;;  %v1033_v14 = vpop.f32.mrb[4].mxu1 }
 0x154   : > { %v353_v15 = vadd.f32 %v1009_v13, %v1509_v56  ;;  %v433_v16 = vadd.f32 %v1033_v14, %v1509_v56  ;;  %v347_v17 = vpop.f32.mrb[5].mxu0  ;;  %v427_v18 = vpop.f32.mrb[5].mxu1 }
 0x155   : > { %906 = vst [vmem:[%s1518_s9 + $0x8] sm:$0xff] %v834_v11   ;;  %914 = vst [vmem:[%s1518_s9 + $0x48] sm:$0xff] %v874_v12   ;;  %v348_v19 = vadd.f32 %v1509_v56, %v347_v17  ;;  %v428_v20 = vadd.f32 %v1509_v56, %v427_v18 }
 0x157   : > { %v839_v21 = vpack.c.bf16 %v353_v15, %v348_v19  ;;  %v879_v22 = vpack.c.bf16 %v433_v16, %v428_v20  ;;  %v1012_v23 = vpop.f32.mrb[6].mxu0  ;;  %v1036_v24 = vpop.f32.mrb[6].mxu1 }
 0x158   : > { %v363_v25 = vadd.f32 %v1012_v23, %v1509_v56  ;;  %v443_v26 = vadd.f32 %v1036_v24, %v1509_v56  ;;  %v357_v27 = vpop.f32.mrb[7].mxu0  ;;  %v437_v28 = vpop.f32.mrb[7].mxu1 }
 0x159   : > { %907 = vst [vmem:[%s1518_s9 + $0x10] sm:$0xff] %v839_v21   ;;  %915 = vst [vmem:[%s1518_s9 + $0x50] sm:$0xff] %v879_v22   ;;  %v358_v29 = vadd.f32 %v1509_v56, %v357_v27  ;;  %v438_v30 = vadd.f32 %v1509_v56, %v437_v28 }
 0x15b   : > { %v844_v31 = vpack.c.bf16 %v363_v25, %v358_v29  ;;  %v884_v32 = vpack.c.bf16 %v443_v26, %v438_v30  ;;  %v1015_v33 = vpop.f32.mrb[8].mxu0  ;;  %v1039_v34 = vpop.f32.mrb[8].mxu1 }
 0x15c   : > { %v373_v35 = vadd.f32 %v1015_v33, %v1509_v56  ;;  %v453_v36 = vadd.f32 %v1039_v34, %v1509_v56  ;;  %v367_v37 = vpop.f32.mrb[9].mxu0  ;;  %v447_v38 = vpop.f32.mrb[9].mxu1 }
 0x15d   : > { %908 = vst [vmem:[%s1518_s9 + $0x18] sm:$0xff] %v844_v31   ;;  %916 = vst [vmem:[%s1518_s9 + $0x58] sm:$0xff] %v884_v32   ;;  %v368_v39 = vadd.f32 %v1509_v56, %v367_v37  ;;  %v448_v40 = vadd.f32 %v1509_v56, %v447_v38 }
 0x15f   : > { %v849_v41 = vpack.c.bf16 %v373_v35, %v368_v39  ;;  %v889_v42 = vpack.c.bf16 %v453_v36, %v448_v40  ;;  %v1018_v43 = vpop.f32.mrb[10].mxu0  ;;  %v1042_v44 = vpop.f32.mrb[10].mxu1 }
 0x160   : > { %v383_v45 = vadd.f32 %v1018_v43, %v1509_v56  ;;  %v463_v46 = vadd.f32 %v1042_v44, %v1509_v56  ;;  %v377_v47 = vpop.f32.mrb[11].mxu0  ;;  %v457_v48 = vpop.f32.mrb[11].mxu1 }
 0x161   : > { %909 = vst [vmem:[%s1518_s9 + $0x20] sm:$0xff] %v849_v41   ;;  %917 = vst [vmem:[%s1518_s9 + $0x60] sm:$0xff] %v889_v42   ;;  %v378_v49 = vadd.f32 %v1509_v56, %v377_v47  ;;  %v458_v50 = vadd.f32 %v1509_v56, %v457_v48 }
 0x163   : > { %v854_v51 = vpack.c.bf16 %v383_v45, %v378_v49  ;;  %v894_v52 = vpack.c.bf16 %v463_v46, %v458_v50  ;;  %v1021_v53 = vpop.f32.mrb[12].mxu0  ;;  %v1045_v54 = vpop.f32.mrb[12].mxu1 }
 0x164   : > { %v393_v55 = vadd.f32 %v1021_v53, %v1509_v56  ;;  %v473_v57 = vadd.f32 %v1045_v54, %v1509_v56  ;;  %v387_v58 = vpop.f32.mrb[13].mxu0  ;;  %v467_v59 = vpop.f32.mrb[13].mxu1 }
 0x165   : > { %910 = vst [vmem:[%s1518_s9 + $0x28] sm:$0xff] %v854_v51   ;;  %918 = vst [vmem:[%s1518_s9 + $0x68] sm:$0xff] %v894_v52   ;;  %v388_v60 = vadd.f32 %v1509_v56, %v387_v58  ;;  %v468_v61 = vadd.f32 %v1509_v56, %v467_v59 }
 0x167   : > { %v859_v62 = vpack.c.bf16 %v393_v55, %v388_v60  ;;  %v899_v63 = vpack.c.bf16 %v473_v57, %v468_v61  ;;  %v1024_v0 = vpop.f32.mrb[14].mxu0  ;;  %v1048_v1 = vpop.f32.mrb[14].mxu1 }
 0x168   : > { %v403_v2 = vadd.f32 %v1024_v0, %v1509_v56  ;;  %v483_v3 = vadd.f32 %v1048_v1, %v1509_v56  ;;  %v397_v4 = vpop.f32.mrb[15].mxu0  ;;  %v477_v5 = vpop.f32.mrb[15].mxu1 }
 0x169   : > { %911 = vst [vmem:[%s1518_s9 + $0x30] sm:$0xff] %v859_v62   ;;  %919 = vst [vmem:[%s1518_s9 + $0x70] sm:$0xff] %v899_v63   ;;  %v398_v6 = vadd.f32 %v1509_v56, %v397_v4  ;;  %v478_v7 = vadd.f32 %v1509_v56, %v477_v5 }
 0x16b   : > { %v864_v8 = vpack.c.bf16 %v403_v2, %v398_v6  ;;  %v904_v9 = vpack.c.bf16 %v483_v3, %v478_v7 }
 0x16d   : > { %912 = vst [vmem:[%s1518_s9 + $0x38] sm:$0xff] %v864_v8   ;;  %920 = vst [vmem:[%s1518_s9 + $0x78] sm:$0xff] %v904_v9  }
 0x16e   : > { %1229 = shalt.err (!%p1226_p7)
}
 0x16f   : > { %s1230_s22 = scalar_lea.hbm %s1565_s27, 2048  ;;  %s1234_s11 = scalar_lea.hbm %s1616_s3, 4096 }
 0x170   : > { %p1231_p9 = scmp.ne.s32.totalorder %s1565_s27, %s1230_s22  ;;  %p1235_p5 = scmp.lt.u32.totalorder %s1565_s27, %s1616_s3 }
 0x171   : > { %p1236_p11 = scmp.lt.u32.totalorder %s1234_s11, %s1230_s22  ;;  %p1238_p4 = scmp.lt.u32.totalorder %s1230_s22, %s1565_s27 }
 0x172   : > { %p1232_p1 = pnand %p1231_p9, %p1409_p12 }
 0x173   : > { %p1237_p2 = por %p1236_p11, %p1235_p5 }
 0x174   : > { %p1233_p0 = pneg %p1232_p1 }
 0x175   : > { %p1239_p6 = por %p1238_p4, %p1237_p2 }
 0x177   : > { %p1240_p8 = pnand %p1239_p6, %p1233_p0 }
 0x179   : > { %1243 = shalt.err (!%p1240_p8)
}
 0x17a   : > { %s1293_s8 = smov 64   ;;  %s1294_s9 = smov 4  }
 0x17b   : > { %1103 = dma.vmem_to_hbm [thread:$0]  (%p1409_p12), %s1567_s25, 2048, %s1565_s27, %s647_s16, %s1293_s8, %s1293_s8, %s1294_s9  }
 0x17c PF: > { %s675_s4 = sand.u32 1, %s1274_s12   ;;  %p1631_p10 = scmp.ne.s32.totalorder %s1621_s19, 0 }
 0x17d   : > { %p1632_p13 = scmp.ge.s32.totalorder %s1286_s15, 2  ;;  %s676_s26 = scalar_lea.sflag [#allocation4], %s675_s4 }
 0x17f   : > { %p1114_p3 = pnand %p1632_p13, %p1631_p10 }
 0x181   : > { %1269 = dma.done.wait (!%p1114_p3), %s676_s26, 2048  }
 0x182   : > { %1271 = vsyncadd (!%p1114_p3), %s676_s26, 4294965248  ;;  %p17_p7 = scmp.ge.s32.totalorder %s1371_s24, 4   ;;  %s1633_s12 = smov %s1278_s13 }
 0x183   : > { %s1634_s13 = smov %s1282_s14  ;;  %s1635_s14 = smov %s1405_s17 }
 0x184   : > { %s1636_s15 = smov %s1371_s24  ;;  %19 = sbr.rel (!%p17_p7) target bundleno = 6 (0x6), region = 81 }
 0x18b   :  { %681 = vsyncpa [#allocation3], 1 }
 0x18c   :  { %683 = vsyncpa [#allocation3 + $0x1], 1 }
 0x18d   :  { %684 = vsyncpa [#allocation6], 1 }
 0x18e   :  { %685 = vsyncpa [#allocation4], 1 }
 0x18f   :  { %687 = vsyncpa [#allocation4 + $0x1], 1 }

</bundles_post_ra>
